<compile_context>
chip_gen: v5e
topology: v5e:2x2
jax: 0.10.0
libtpu: 0.0.40
codegen_flags: <defaults>
</compile_context>

<pallas_src>
import math

import jax
import jax.numpy as jnp
from jax import lax
from jax.experimental import pallas as pl
from jax.experimental.pallas import tpu as pltpu

# ---------------- MelSpectrogram hyper-parameters (torchaudio defaults) -----
SAMPLE_RATE = 16000
N_FFT = 400
WIN_LENGTH = 400
HOP_LENGTH = 160
N_MELS = 80
F_MIN = 0.0
F_MAX = SAMPLE_RATE / 2.0
N_FREQS = N_FFT // 2 + 1  # 201 (one-sided spectrum)


def _round_up(x, m):
    return ((x + m - 1) // m) * m


N_FREQ_PAD = _round_up(N_FREQS, 128)   # 256 (lane aligned)
MAX_TILE_F = 1024                      # frames per grid step (mult. of 8 & 128)


# ---------------- parameter construction (once, at module scope) ------------
def _hann_window(n):
    k = jnp.arange(n, dtype=jnp.float32)
    return 0.5 - 0.5 * jnp.cos(2.0 * math.pi * k / n)  # periodic Hann (torch default)


def _hz_to_mel(f):
    return 2595.0 * jnp.log10(1.0 + f / 700.0)


def _mel_to_hz(m):
    return 700.0 * (10.0 ** (m / 2595.0) - 1.0)


def _mel_filterbank():
    """torchaudio melscale_fbanks (HTK, norm=None): shape (n_freqs, n_mels)."""
    all_freqs = jnp.linspace(0.0, SAMPLE_RATE / 2.0, N_FREQS)
    m_min = _hz_to_mel(jnp.asarray(F_MIN))
    m_max = _hz_to_mel(jnp.asarray(F_MAX))
    m_pts = jnp.linspace(m_min, m_max, N_MELS + 2)
    f_pts = _mel_to_hz(m_pts)
    f_diff = f_pts[1:] - f_pts[:-1]                       # (n_mels+1,)
    slopes = f_pts[None, :] - all_freqs[:, None]          # (n_freqs, n_mels+2)
    down = -slopes[:, :-2] / f_diff[:-1]
    up = slopes[:, 2:] / f_diff[1:]
    fb = jnp.maximum(0.0, jnp.minimum(down, up))
    return fb.astype(jnp.float32)                         # (201, 80)


def _build_constants():
    n = jnp.arange(N_FFT, dtype=jnp.float32)[:, None]
    k = jnp.arange(N_FREQS, dtype=jnp.float32)[None, :]
    ang = 2.0 * math.pi * n * k / N_FFT
    w = _hann_window(N_FFT)[:, None]
    cos_m = (w * jnp.cos(ang)).astype(jnp.float32)        # (400, 201)
    sin_m = (w * -jnp.sin(ang)).astype(jnp.float32)       # (400, 201)
    fb = _mel_filterbank()                                 # (201, 80)

    # Fused DFT weight: columns [0:201) = cos, [256:457) = sin, rest zero.
    dft = jnp.zeros((N_FFT, 2 * N_FREQ_PAD), jnp.float32)
    dft = dft.at[:, :N_FREQS].set(cos_m)
    dft = dft.at[:, N_FREQ_PAD:N_FREQ_PAD + N_FREQS].set(sin_m)

    # Transposed mel filterbank: (n_mels, n_freq_pad); padded freq cols are 0.
    melT = jnp.zeros((N_MELS, N_FREQ_PAD), jnp.float32)
    melT = melT.at[:, :N_FREQS].set(fb.T)
    return dft.astype(jnp.bfloat16), melT.astype(jnp.bfloat16), cos_m, sin_m, fb


_DFT_W_BF16, _MELT_W_BF16, _COS_F32, _SIN_F32, _MEL_F32 = _build_constants()


# ---------------- Pallas kernel: fused DFT + power spectrum + mel proj ------
def _melspec_kernel(frames_ref, dft_ref, melT_ref, out_ref):
    # frames_ref: (TILE_F, 400) bf16   dft_ref:  (400, 512) bf16
    # melT_ref:   (80, 256)  bf16      out_ref:  (80, TILE_F) f32
    spec = jnp.dot(frames_ref[...], dft_ref[...],
                   preferred_element_type=jnp.float32)          # (TILE_F, 512) f32
    re = spec[:, :N_FREQ_PAD]
    im = spec[:, N_FREQ_PAD:]
    power = (re * re + im * im).astype(jnp.bfloat16)            # |X|^2, (TILE_F, 256)
    # mel^T @ power^T: output lands directly in (n_mels, frames) layout, so the
    # wrapper needs no slice / transpose passes over the result.
    out_ref[...] = lax.dot_general(
        melT_ref[...], power,
        dimension_numbers=(((1,), (1,)), ((), ())),
        preferred_element_type=jnp.float32)                     # (80, TILE_F)


def _choose_tile_f(batch, n_frames):
    """Frame-axis tile: as large as possible, lane/sublane legal, and keeping
    >= 2 grid steps so v7x megacore has work to shard."""
    if n_frames > MAX_TILE_F:
        return MAX_TILE_F                       # multiple of 8 and 128
    if batch >= 2 or n_frames <= 128:
        return n_frames                         # block == full axis (always legal)
    # batch == 1 and a moderate number of frames: split into >= 2 lane-aligned
    # tiles (multiple of 128 so the output block stays legal).
    return _round_up((n_frames + 1) // 2, 128)


def _run_melspec_kernel(frames):
    """frames: (B, n_frames, N_FFT) bf16  ->  (B, N_MELS, n_frames) f32."""
    b, n_frames, _ = frames.shape
    tile_f = _choose_tile_f(b, n_frames)
    grid = (b, pl.cdiv(n_frames, tile_f))       # partial boundary block is masked

    rows = b * n_frames
    cost = pl.CostEstimate(
        flops=2 * rows * (N_FFT * 2 * N_FREQ_PAD + N_FREQ_PAD * N_MELS),
        transcendentals=0,
        bytes_accessed=(rows * N_FFT * 2                       # frames (bf16)
                        + N_FFT * 2 * N_FREQ_PAD * 2           # DFT weight
                        + N_MELS * N_FREQ_PAD * 2              # mel weight
                        + rows * N_MELS * 4))                  # output (f32)

    return pl.pallas_call(
        _melspec_kernel,
        out_shape=jax.ShapeDtypeStruct((b, N_MELS, n_frames), jnp.float32),
        grid_spec=pltpu.PrefetchScalarGridSpec(
            num_scalar_prefetch=0,
            grid=grid,
            in_specs=[
                # frames: one batch element, tile_f frames per step; last dim is
                # the full 400-sample window (no pad-to-512 copy, no row pad).
                pl.BlockSpec((None, tile_f, N_FFT), lambda bi, fi: (bi, fi, 0)),
                # fused cos|sin DFT weight: constant block across the grid
                pl.BlockSpec((N_FFT, 2 * N_FREQ_PAD), lambda bi, fi: (0, 0)),
                # transposed mel filterbank: constant block across the grid
                pl.BlockSpec((N_MELS, N_FREQ_PAD), lambda bi, fi: (0, 0)),
            ],
            out_specs=pl.BlockSpec((None, N_MELS, tile_f),
                                   lambda bi, fi: (bi, 0, fi)),
        ),
        compiler_params=pltpu.CompilerParams(
            dimension_semantics=("parallel", "parallel"),
            vmem_limit_bytes=48 * 1024 * 1024),
        cost_estimate=cost,
    )(frames, _DFT_W_BF16, _MELT_W_BF16)


# ---------------- MelSpec forward (matches torchaudio semantics) ------------
@jax.jit
def mel_spec_forward(x):
    """x: (B, T) float32 waveform  ->  (B, n_mels, n_frames) float32."""
    b, t = x.shape
    pad = N_FFT // 2
    if t < pad + 1:                               # reflect padding needs T >= pad+1
        raise ValueError(f"waveform too short for reflect padding: T={t} < {pad + 1}")
    # center=True reflect padding; cast to bf16 BEFORE the framing gather so the
    # 2.5x-duplicating gather moves half the bytes.
    xp = jnp.pad(x, ((0, 0), (pad, pad)), mode="reflect").astype(jnp.bfloat16)
    n_frames = 1 + t // HOP_LENGTH

    idx = (jnp.arange(n_frames)[:, None] * HOP_LENGTH
           + jnp.arange(N_FFT)[None, :])                      # (n_frames, n_fft)
    frames = xp[:, idx]                                       # (B, n_frames, 400) bf16
    # TODO(synk): in-kernel framing (manual DMA of contiguous waveform windows +
    # 3 hop-aligned sub-matmuls) would remove the 2.5x duplication done here.
    return _run_melspec_kernel(frames)                        # (B, n_mels, n_frames)


# ---------------- pure-JAX f32 reference for sanity check -------------------
def mel_spec_reference(x):
    b, t = x.shape
    pad = N_FFT // 2
    xp = jnp.pad(x, ((0, 0), (pad, pad)), mode="reflect")
    n_frames = 1 + t // HOP_LENGTH
    idx = (jnp.arange(n_frames)[:, None] * HOP_LENGTH
           + jnp.arange(N_FFT)[None, :])
    frames = xp[:, idx].astype(jnp.float32)                   # (B, F, n_fft)
    re = jnp.einsum("bfn,nk->bfk", frames, _COS_F32)
    im = jnp.einsum("bfn,nk->bfk", frames, _SIN_F32)
    power = re * re + im * im
    mel = jnp.einsum("bfk,km->bfm", power, _MEL_F32)
    return jnp.transpose(mel, (0, 2, 1))


if __name__ == "__main__":
    key = jax.random.PRNGKey(0)
    batch, wav_len = 2, 1600                                   # 0.1 s of 16 kHz audio
    x = jax.random.normal(key, (batch, wav_len), dtype=jnp.float32)

    out = jax.block_until_ready(mel_spec_forward(x))
    ref = jax.block_until_ready(mel_spec_reference(x))

    n_frames = 1 + wav_len // HOP_LENGTH
    assert out.shape == (batch, N_MELS, n_frames), out.shape
    assert out.dtype == jnp.float32

    # Kernel uses bf16 MXU inputs (f32 accumulation); validate against the f32
    # reference with a scale-aware tolerance (~2% of the spectrogram scale).
    scale = float(jnp.max(jnp.abs(ref)))
    rel_fro = float(jnp.linalg.norm(out - ref) / (jnp.linalg.norm(ref) + 1e-12))
    assert rel_fro < 2e-2, f"relative Frobenius error too large: {rel_fro}"
    assert jnp.allclose(out, ref, rtol=3e-2, atol=2e-2 * scale), "mismatch vs reference"
    print("KERNEL_OK")
</pallas_src>

<mosaic_0001>
module attributes {stable_mosaic.version = 11 : i64} {
  func.func @_melspec_kernel(%arg0: i32, %arg1: i32, %arg2: memref<1x11x400xbf16, #tpu.memory_space<vmem>>, %arg3: memref<400x512xbf16, #tpu.memory_space<vmem>>, %arg4: memref<80x256xbf16, #tpu.memory_space<vmem>>, %arg5: memref<1x80x11xf32, #tpu.memory_space<vmem>>) attributes {dimension_semantics = [#tpu.dimension_semantics<parallel>, #tpu.dimension_semantics<parallel>], iteration_bounds = array<i64: 2, 1>, scalar_prefetch = 0 : i64, scratch_operands = 0 : i64, tpu.core_type = #tpu.core_type<tc>, window_params = [{transform_indices = @transform_0, window_bounds = array<i64: 1, 11, 400>}, {pipeline_mode = #tpu.pipeline_mode<synchronous>, transform_indices = @transform_1, window_bounds = array<i64: 400, 512>}, {pipeline_mode = #tpu.pipeline_mode<synchronous>, transform_indices = @transform_2, window_bounds = array<i64: 80, 256>}, {transform_indices = @transform_3, window_bounds = array<i64: 1, 80, 11>}]} {
    %c0 = arith.constant 0 : index
    %c0_0 = arith.constant 0 : index
    %c0_1 = arith.constant 0 : index
    %0 = vector.load %arg2[%c0, %c0_0, %c0_1] : memref<1x11x400xbf16, #tpu.memory_space<vmem>>, vector<1x11x400xbf16>
    %1 = vector.shape_cast %0 : vector<1x11x400xbf16> to vector<11x400xbf16>
    %c0_2 = arith.constant 0 : index
    %c0_3 = arith.constant 0 : index
    %2 = vector.load %arg3[%c0_2, %c0_3] : memref<400x512xbf16, #tpu.memory_space<vmem>>, vector<400x512xbf16>
    %cst = arith.constant dense<0.000000e+00> : vector<11x512xf32>
    %3 = tpu.matmul %1, %2, %cst {dimension_numbers = #tpu.dot_dimension_numbers<[1], [0], [0], [1], [0, 0, 1, 1], [], []>} : vector<11x400xbf16>, vector<400x512xbf16>, vector<11x512xf32> -> vector<11x512xf32>
    %4 = vector.extract_strided_slice %3 {offsets = [0, 0], sizes = [11, 256], strides = [1, 1]} : vector<11x512xf32> to vector<11x256xf32>
    %5 = vector.extract_strided_slice %3 {offsets = [0, 256], sizes = [11, 256], strides = [1, 1]} : vector<11x512xf32> to vector<11x256xf32>
    %6 = arith.mulf %4, %4 : vector<11x256xf32>
    %7 = arith.mulf %5, %5 : vector<11x256xf32>
    %8 = arith.addf %6, %7 : vector<11x256xf32>
    %9 = arith.truncf %8 : vector<11x256xf32> to vector<11x256xbf16>
    %c0_4 = arith.constant 0 : index
    %c0_5 = arith.constant 0 : index
    %10 = vector.load %arg4[%c0_4, %c0_5] : memref<80x256xbf16, #tpu.memory_space<vmem>>, vector<80x256xbf16>
    %cst_6 = arith.constant dense<0.000000e+00> : vector<80x11xf32>
    %11 = tpu.matmul %10, %9, %cst_6 {dimension_numbers = #tpu.dot_dimension_numbers<[1], [1], [0], [0], [0, 0, 1, 0], [], []>} : vector<80x256xbf16>, vector<11x256xbf16>, vector<80x11xf32> -> vector<80x11xf32>
    %c0_7 = arith.constant 0 : index
    %c0_8 = arith.constant 0 : index
    %c0_9 = arith.constant 0 : index
    %12 = vector.load %arg5[%c0_7, %c0_8, %c0_9] : memref<1x80x11xf32, #tpu.memory_space<vmem>>, vector<1x80x11xf32>
    %13 = vector.shape_cast %12 : vector<1x80x11xf32> to vector<80x11xf32>
    %14 = vector.shape_cast %11 : vector<80x11xf32> to vector<1x80x11xf32>
    tpu.vector_store %arg5[%c0_7, %c0_8, %c0_9], %14 {strides = array<i32>} : memref<1x80x11xf32, #tpu.memory_space<vmem>>, vector<1x80x11xf32>,
    return
  }
  func.func @transform_0(%arg0: i32, %arg1: i32) -> (i32, i32, i32) {
    %c0_i32 = arith.constant 0 : i32
    %c0_i32_0 = arith.constant 0 : i32
    return %arg0, %arg1, %c0_i32 : i32, i32, i32
  }
  func.func @transform_1(%arg0: i32, %arg1: i32) -> (i32, i32) {
    %c0_i32 = arith.constant 0 : i32
    %c0_i32_0 = arith.constant 0 : i32
    %c0_i32_1 = arith.constant 0 : i32
    return %c0_i32, %c0_i32_0 : i32, i32
  }
  func.func @transform_2(%arg0: i32, %arg1: i32) -> (i32, i32) {
    %c0_i32 = arith.constant 0 : i32
    %c0_i32_0 = arith.constant 0 : i32
    %c0_i32_1 = arith.constant 0 : i32
    return %c0_i32, %c0_i32_0 : i32, i32
  }
  func.func @transform_3(%arg0: i32, %arg1: i32) -> (i32, i32, i32) {
    %c0_i32 = arith.constant 0 : i32
    %c0_i32_0 = arith.constant 0 : i32
    return %arg0, %c0_i32, %arg1 : i32, i32, i32
  }
}

</mosaic_0001>

<bundles_post_ra>
// kernel: reverse.1
= control target key start
LH: loop header
LB: loop body
LE: loop exit
PB: predicated region body
PF: predicated region fallthrough
CT: control target
= control target key end

     0   :  { %v2_v0 = vlaneseq  ;;  %s305_s0 = inlined_call_operand.vmem [shape: bf16[2,256], index: 0, kind: input, shape index: {}]   ;;  %s306_s1 = inlined_call_operand.vmem [shape: bf16[2,256], index: 1, kind: output, shape index: {}]  }
   0x2   :  { %v3_v1 = vsub.s32 127, %v2_v0 }
   0x4   :  { %4 = vset.pattern.permute.xlu0 %v3_v1 }
   0x5   :  { %s265_s6 = smov 0   ;;  %s267_s7 = smov 0  }
   0x6   :  { %s269_s8 = smov 0  }
   0x7 LB: > { %s201_s9 = sadd.s32 4294967295, %s253_s8   ;;  %s19_s10 = sadd.s32 1, %s249_s7  ;;  %s253_s8 = sphi %s269_s8, %s10_s8   ;;  %s249_s7 = sphi %s267_s7, %s308_s7   ;;  %s245_s6 = sphi %s265_s6, %s307_s6  }
   0x8   : > { %p20_p0 = scmp.ge.s32.totalorder %s19_s10, 2  ;;  %p203_p1 = scmp.ge.s32.totalorder %s253_s8, 2 }
   0x9   : > { %s38_s11 = sand.u32 (!%p203_p1), 1, %s253_s8   ;;  %s40_s12 = ssub.s32 (!%p203_p1), 1, %s249_s7 }
   0xa   : > { %s310_s10 = smov (%p20_p0, %s19_s10), 0  ;;  %36 = sbr.rel (%p203_p1) target bundleno = 17 (0x11), region = 16 }
   0xb   : > { %s43_s15 = scalar_lea.vmem (!%p203_p1), %s305_s0, %s40_s12  ;;  %s39_s16 = scalar_lea.vmem (!%p203_p1), [#allocation1], %s38_s11 }
   0xf   : > { %v60_v2 = vld [vmem:[%s43_s15] sm:$0x1] }
  0x10   : > { %61 = vst [vmem:[%s39_s16] sm:$0x1] %v60_v2 }
  0x11 PF: > { %p204_p2 = scmp.ge.s32.totalorder %s253_s8, 1  ;;  %p78_p3 = scmp.lt.s32.totalorder %s253_s8, 3 }
  0x13   : > { %p79_p4 = pnand %p204_p2, %p78_p3 }
  0x14   : > { %s88_s17 = sand.u32 (!%p79_p4), 1, %s201_s9   ;;  %s125_s22 = scalar_lea.vmem (!%p79_p4), %s306_s1, %s245_s6 }
  0x15   : > { %82 = sbr.rel (%p79_p4) target bundleno = 171 (0xab), region = 50  ;;  %s89_s18 = scalar_lea.vmem (!%p79_p4), [#allocation1], %s88_s17 }
  0x16   : > { %s92_s19 = scalar_lea.vmem (!%p79_p4), [#allocation3], %s88_s17 }
  0x1a   : > { %v104_v3 = vld [vmem:[%s89_s18] sm:$0x1] }
  0x1b   : > { %v105_v4 = vunpack.c.l.bf16 %v104_v3 }
  0x1d   : > { %107 = vst [vmem:[#allocation0] sm:$0x3] %v105_v4 }
  0x24   : > { %v109_v5 = vld [vmem:[#allocation0] sm:$0xff] }
  0x25   : > { %110 = vperm.xlu0 %4, %v109_v5  }
  0x97   : > { %v111_v6 = vpop.permute.xlu0 %110 }
  0x98   : > { %112 = vst [vmem:[#allocation2] sm:$0xff] %v111_v6 }
  0x9f   : > { %v115_v7 = vld [vmem:[#allocation2] sm:$0x3] }
  0xa0   : > { %v116_v8 = vpack.c.bf16 0.0, %v115_v7 }
  0xa2   : > { %119 = vst [vmem:[%s92_s19] sm:$0x1] %v116_v8 }
  0xa9   : > { %v142_v9 = vld [vmem:[%s92_s19] sm:$0x1] }
  0xaa   : > { %143 = vst [vmem:[%s125_s22] sm:$0x1] %v142_v9 }
  0xab PF: > { %s10_s8 = sadd.s32 1, %s253_s8   ;;  %s307_s6 = smov %s249_s7 }
  0xac   : > { %p7_p5 = scmp.ge.s32.totalorder %s10_s8, 4   ;;  %s308_s7 = smov %s310_s10 }
  0xae   :  { %9 = sbr.rel (!%p7_p5) target bundleno = 7 (0x7), region = 110 }

// kernel: mel_spec_forward.1
= control target key start
LH: loop header
LB: loop body
LE: loop exit
PB: predicated region body
PF: predicated region fallthrough
CT: control target
= control target key end

     0   :  { %s1955_s12 = smov 0   ;;  %s1957_s13 = smov 0   ;;  %s2716_s0 = inlined_call_operand.vmem [shape: bf16[2,11,400], index: 0, kind: input, shape index: {}]   ;;  %s2717_s1 = inlined_call_operand.vmem [shape: bf16[400,512], index: 1, kind: input, shape index: {}]   ;;  %s2718_s2 = inlined_call_operand.vmem [shape: bf16[80,256], index: 2, kind: input, shape index: {}]   ;;  %s2719_s3 = inlined_call_operand.vmem [shape: f32[2,80,11], index: 3, kind: output, shape index: {}]  }
   0x1   :  { %s1959_s14 = smov 0  }
   0x2 LB: > { %s25_s15 = sadd.s32 1, %s1929_s13  ;;  %p1305_p0 = scmp.ge.s32.totalorder %s1933_s14, 1  ;;  %s1933_s14 = sphi %s1959_s14, %s13_s14   ;;  %s1929_s13 = sphi %s1957_s13, %s2721_s13   ;;  %s1925_s12 = sphi %s1955_s12, %s2720_s12  }
   0x3   : > { %p27_p1 = scmp.ge.s32.totalorder %s25_s15, 2  ;;  %p159_p2 = scmp.lt.s32.totalorder %s1933_s14, 3 }
   0x5   : > { %s2723_s15 = smov (%p27_p1, %s25_s15), 0  ;;  %p160_p3 = pnand %p1305_p0, %p159_p2 }
   0x6   : > { %p192_p4 = scmp.lt.s32.totalorder (!%p160_p3), %s1925_s12, 1 }
   0x7   : > { %163 = sbr.rel (%p160_p3) target bundleno = 505 (0x1f9), region = 32 }
   0xc   : > { %v1439_v0 = vld [vmem:[%s2717_s1 + $0xe0] sm:$0xf]  ;;  %v1806_v1 = vld [vmem:[%s2717_s1 + $0xec] sm:$0xf0]  ;;  %v1836_v28 = vld [vmem:[%s2717_s1 + $0x1e4] sm:$0xf] }
   0xd   : > { %v1695_v2 = vld [vmem:[%s2717_s1 + $0x2e0] sm:$0xf]  ;;  %v1440_v3 = vor.u32 %v1806_v1, %v1439_v0  ;;  %v1870_v4 = vld [vmem:[%s2717_s1 + $0x2ec] sm:$0xf0]  ;;  %v1569_v29 = vld [vmem:[%s2717_s1 + $0x1f0] sm:$0xf0] }
   0xe   : > { %v1423_v5 = vld [vmem:[%s2717_s1 + $0xc0] sm:$0xf]  ;;  %v1802_v6 = vld [vmem:[%s2717_s1 + $0xcc] sm:$0xf0]  ;;  %v1696_v7 = vor.u32 %v1870_v4, %v1695_v2  ;;  %v1572_v30 = vor.u32 %v1836_v28, %v1569_v29  ;;  %v1832_v32 = vld [vmem:[%s2717_s1 + $0x1c4] sm:$0xf] }
   0xf   : > { %v1679_v8 = vld [vmem:[%s2717_s1 + $0x2c0] sm:$0xf]  ;;  %v1866_v9 = vld [vmem:[%s2717_s1 + $0x2cc] sm:$0xf0]  ;;  %838 = vmatpush.bf16.msra.mxu1 %v1440_v3  ;;  %v1424_v10 = vor.u32 %v1802_v6, %v1423_v5  ;;  %v1553_v36 = vld [vmem:[%s2717_s1 + $0x1d0] sm:$0xf0] }
  0x10   : > { %866 = vmatpush.bf16.msra.mxu2 %v1696_v7  ;;  %v1680_v11 = vor.u32 %v1866_v9, %v1679_v8  ;;  %v1407_v12 = vld [vmem:[%s2717_s1 + $0xa0] sm:$0xf]  ;;  %v1798_v13 = vld [vmem:[%s2717_s1 + $0xac] sm:$0xf0]  ;;  %908 = vmatpush.bf16.msra.mxu0 %v1572_v30  ;;  %v1556_v39 = vor.u32 %v1832_v32, %v1553_v36  ;;  %s2725_s12 = smov (!%p192_p4, %s1925_s12), 1  ;;  %vm834_vm0 = vcmask 130048  }
  0x11   : > { %v1663_v14 = vld [vmem:[%s2717_s1 + $0x2a0] sm:$0xf]  ;;  %v1862_v15 = vld [vmem:[%s2717_s1 + $0x2ac] sm:$0xf0]  ;;  %v1408_v16 = vor.u32 %v1798_v13, %v1407_v12  ;;  %v1828_v40 = vld [vmem:[%s2717_s1 + $0x1a4] sm:$0xf] }
  0x12   : > { %v1664_v17 = vor.u32 %v1862_v15, %v1663_v14  ;;  %v1391_v18 = vld [vmem:[%s2717_s1 + $0x80] sm:$0xf]  ;;  %v1794_v19 = vld [vmem:[%s2717_s1 + $0x8c] sm:$0xf0]  ;;  %v1537_v41 = vld [vmem:[%s2717_s1 + $0x1b0] sm:$0xf0] }
  0x13   : > { %839 = vmatpush.bf16.msra.mxu1 %v1424_v10  ;;  %v1647_v20 = vld [vmem:[%s2717_s1 + $0x280] sm:$0xf]  ;;  %v1858_v21 = vld [vmem:[%s2717_s1 + $0x28c] sm:$0xf0]  ;;  %v1392_v22 = vor.u32 %v1794_v19, %v1391_v18  ;;  %v1540_v46 = vor.u32 %v1828_v40, %v1537_v41  ;;  %v1824_v49 = vld [vmem:[%s2717_s1 + $0x184] sm:$0xf] }
  0x14   : > { %867 = vmatpush.bf16.msra.mxu2 %v1680_v11  ;;  %v1648_v23 = vor.u32 %v1858_v21, %v1647_v20  ;;  %v1375_v24 = vld [vmem:[%s2717_s1 + $0x60] sm:$0xf]  ;;  %v1790_v25 = vld [vmem:[%s2717_s1 + $0x6c] sm:$0xf0]  ;;  %909 = vmatpush.bf16.msra.mxu0 %v1556_v39  ;;  %s1771_s21 = sshll.u32 %s2725_s12, 5  ;;  %vm1204_vm1 = vcmask 89088  }
  0x15   : > { %v1631_v26 = vld [vmem:[%s2717_s1 + $0x260] sm:$0xf]  ;;  %v1854_v27 = vld [vmem:[%s2717_s1 + $0x26c] sm:$0xf0]  ;;  %v1376_v31 = vor.u32 %v1790_v25, %v1375_v24  ;;  %v1521_v52 = vld [vmem:[%s2717_s1 + $0x190] sm:$0xf0]  ;;  %s2118_s17 = scalar_lea.vmem %s2716_s0, %s1771_s21 }
  0x16   : > { %v1632_v33 = vor.u32 %v1854_v27, %v1631_v26  ;;  %v1359_v34 = vld [vmem:[%s2717_s1 + $0x40] sm:$0xf]  ;;  %v1786_v35 = vld [vmem:[%s2717_s1 + $0x4c] sm:$0xf0]  ;;  %v1524_v60 = vor.u32 %v1824_v49, %v1521_v52  ;;  %v1804_v62 = vld [vmem:[%s2717_s1 + $0xe4] sm:$0xf] }
  0x17   : > { %840 = vmatpush.bf16.msra.mxu1 %v1408_v16  ;;  %v1615_v37 = vld [vmem:[%s2717_s1 + $0x240] sm:$0xf]  ;;  %v1850_v38 = vld [vmem:[%s2717_s1 + $0x24c] sm:$0xf0]  ;;  %v1360_v42 = vor.u32 %v1786_v35, %v1359_v34  ;;  %v1447_v0 = vld [vmem:[%s2717_s1 + $0xe8] sm:$0xf] }
  0x18   : > { %868 = vmatpush.bf16.msra.mxu2 %v1664_v17  ;;  %v1616_v43 = vor.u32 %v1850_v38, %v1615_v37  ;;  %v1343_v44 = vld [vmem:[%s2717_s1 + $0x20] sm:$0xf]  ;;  %v1782_v45 = vld [vmem:[%s2717_s1 + $0x2c] sm:$0xf0]  ;;  %910 = vmatpush.bf16.msra.mxu0 %v1540_v46  ;;  %v1807_v1 = vld [vmem:[%s2717_s1 + $0xf4] sm:$0xf0] }
  0x19   : > { %v1599_v47 = vld [vmem:[%s2717_s1 + $0x220] sm:$0xf]  ;;  %v1846_v48 = vld [vmem:[%s2717_s1 + $0x22c] sm:$0xf0]  ;;  %v1344_v53 = vor.u32 %v1782_v45, %v1343_v44  ;;  %v1441_v2 = vld [vmem:[%s2717_s1 + $0xf0] sm:$0xf0]  ;;  %v1448_v5 = vor.u32 %v1807_v1, %v1447_v0 }
  0x1a   : > { %v1327_v50 = vld [vmem:[%s2717_s1] sm:$0xf]  ;;  %v1778_v51 = vld [vmem:[%s2717_s1 + $0xc] sm:$0xf0]  ;;  %v1600_v57 = vor.u32 %v1846_v48, %v1599_v47  ;;  %v1820_v3 = vld [vmem:[%s2717_s1 + $0x164] sm:$0xf]  ;;  %v1444_v17 = vor.u32 %v1804_v62, %v1441_v2 }
  0x1b   : > { %841 = vmatpush.bf16.msra.mxu1 %v1392_v22  ;;  %v1583_v54 = vld [vmem:[%s2717_s1 + $0x200] sm:$0xf]  ;;  %v1842_v55 = vld [vmem:[%s2717_s1 + $0x20c] sm:$0xf0]  ;;  %v1505_v4 = vld [vmem:[%s2717_s1 + $0x170] sm:$0xf0]  ;;  %v1328_v6 = vor.u32 %v1778_v51, %v1327_v50 }
  0x1c   : > { %869 = vmatpush.bf16.msra.mxu2 %v1648_v23  ;;  %v1711_v56 = vld [vmem:[%s2717_s1 + $0x300] sm:$0xf]  ;;  %v1838_v59 = vld [vmem:[%s2717_s1 + $0x1ec] sm:$0xf0]  ;;  %v1431_v11 = vld [vmem:[%s2717_s1 + $0xc8] sm:$0xf]  ;;  %v1584_v12 = vor.u32 %v1842_v55, %v1583_v54  ;;  %911 = vmatpush.bf16.msra.mxu0 %v1524_v60  ;;  %v1508_v20 = vor.u32 %v1820_v3, %v1505_v4 }
  0x1d   : > { %v1567_v58 = vld [vmem:[%s2717_s1 + $0x1e0] sm:$0xf]  ;;  %v1874_v61 = vld [vmem:[%s2717_s1 + $0x30c] sm:$0xf0]  ;;  %v1319_v14 = vld [vmem:[%s2118_s17 + $0x8] sm:$0xf] }
  0x1e   : > { %v1712_v63 = vor.u32 %v1874_v61, %v1711_v56  ;;  %v1551_v7 = vld [vmem:[%s2717_s1 + $0x1c0] sm:$0xf]  ;;  %v1834_v8 = vld [vmem:[%s2717_s1 + $0x1cc] sm:$0xf0]  ;;  %v1568_v13 = vor.u32 %v1838_v59, %v1567_v58  ;;  %v1775_v15 = vld [vmem:[%s2118_s17 + $0x14] sm:$0x30] }
  0x1f   : > { %842 = vmatpush.bf16.msra.mxu1 %v1376_v31  ;;  %v1311_v9 = vld [vmem:[%s2118_s17] sm:$0xf]  ;;  %v1774_v10 = vld [vmem:[%s2118_s17 + $0xc] sm:$0x30]  ;;  %v1803_v16 = vld [vmem:[%s2717_s1 + $0xd4] sm:$0xf0]  ;;  %v2167_v27 = vor.u32 %v1775_v15, %v1319_v14  ;;  %v1552_v29 = vor.u32 %v1834_v8, %v1551_v7 }
  0x20   : > { %870 = vmatpush.bf16.msra.mxu2 %v1632_v33  ;;  %887 = vmatpush.bf16.msra.mxu3 %v1712_v63  ;;  %v1800_v18 = vld [vmem:[%s2717_s1 + $0xc4] sm:$0xf]  ;;  %v1425_v19 = vld [vmem:[%s2717_s1 + $0xd0] sm:$0xf0]  ;;  %v1773_v21 = vld [vmem:[%s2118_s17 + $0xc] sm:$0xf]  ;;  %v2158_v22 = vor.u32 %v1774_v10, %v1311_v9  ;;  %v1432_v25 = vor.u32 %v1803_v16, %v1431_v11 }
  0x21   : > { %v1816_v23 = vld [vmem:[%s2717_s1 + $0x144] sm:$0xf]  ;;  %v1489_v24 = vld [vmem:[%s2717_s1 + $0x150] sm:$0xf0]  ;;  %v1321_v26 = vld [vmem:[%s2118_s17 + $0x18] sm:$0x30]  ;;  %v1428_v32 = vor.u32 %v1800_v18, %v1425_v19  ;;  %912 = vmatpush.bf16.msra.mxu0 %v1508_v20 }
  0x22   : > { %v2169_v28 = vor.u32 %v1773_v21, %v1321_v26  ;;  %v1415_v30 = vld [vmem:[%s2717_s1 + $0xa8] sm:$0xf]  ;;  %v1799_v31 = vld [vmem:[%s2717_s1 + $0xb4] sm:$0xf0]  ;;  %v1535_v33 = vld [vmem:[%s2717_s1 + $0x1a0] sm:$0xf]  ;;  %v1492_v36 = vor.u32 %v1816_v23, %v1489_v24 }
  0x23   : > { %843 = vmatpush.bf16.msra.mxu1 %v1360_v42  ;;  %v1830_v34 = vld [vmem:[%s2717_s1 + $0x1ac] sm:$0xf0]  ;;  %v1796_v35 = vld [vmem:[%s2717_s1 + $0xa4] sm:$0xf]  ;;  %v1409_v37 = vld [vmem:[%s2717_s1 + $0xb0] sm:$0xf0]  ;;  %v1416_v40 = vor.u32 %v1799_v31, %v1415_v30 }
  0x24   : > { %871 = vmatpush.bf16.msra.mxu2 %v1616_v43  ;;  %950 = vmatpush.bf16.msrb.mxu3 %v1448_v5  ;;  %v1812_v38 = vld [vmem:[%s2717_s1 + $0x124] sm:$0xf]  ;;  %v1473_v39 = vld [vmem:[%s2717_s1 + $0x130] sm:$0xf0]  ;;  %v1536_v41 = vor.u32 %v1830_v34, %v1535_v33  ;;  %v1399_v42 = vld [vmem:[%s2717_s1 + $0x88] sm:$0xf]  ;;  %v1412_v44 = vor.u32 %v1796_v35, %v1409_v37 }
  0x25   : > { %1725 = vmatmul.msk.bf16.vlgmr.msra.gmra.mxu3 %vm834_vm0, %v2169_v28  ;;  %v1795_v43 = vld [vmem:[%s2717_s1 + $0x94] sm:$0xf0]  ;;  %v1519_v45 = vld [vmem:[%s2717_s1 + $0x180] sm:$0xf]  ;;  %v1826_v46 = vld [vmem:[%s2717_s1 + $0x18c] sm:$0xf0]  ;;  %913 = vmatpush.bf16.msra.mxu0 %v1492_v36  ;;  %v1476_v48 = vor.u32 %v1812_v38, %v1473_v39 }
  0x26   : > { %v1792_v47 = vld [vmem:[%s2717_s1 + $0x84] sm:$0xf]  ;;  %v1393_v49 = vld [vmem:[%s2717_s1 + $0x90] sm:$0xf0]  ;;  %v1400_v52 = vor.u32 %v1795_v43, %v1399_v42  ;;  %v1791_v54 = vld [vmem:[%s2717_s1 + $0x74] sm:$0xf0]  ;;  %v1520_v55 = vor.u32 %v1826_v46, %v1519_v45 }
  0x27   : > { %844 = vmatpush.bf16.msra.mxu1 %v1344_v53  ;;  %v1808_v50 = vld [vmem:[%s2717_s1 + $0x104] sm:$0xf]  ;;  %v1457_v51 = vld [vmem:[%s2717_s1 + $0x110] sm:$0xf0]  ;;  %v1383_v53 = vld [vmem:[%s2717_s1 + $0x68] sm:$0xf] }
  0x28   : > { %872 = vmatpush.bf16.msra.mxu2 %v1600_v57  ;;  %951 = vmatpush.bf16.msrb.mxu3 %v1432_v25  ;;  %v1503_v56 = vld [vmem:[%s2717_s1 + $0x160] sm:$0xf]  ;;  %v1396_v57 = vor.u32 %v1792_v47, %v1393_v49  ;;  %v1822_v58 = vld [vmem:[%s2717_s1 + $0x16c] sm:$0xf0]  ;;  %v1460_v59 = vor.u32 %v1808_v50, %v1457_v51  ;;  %v1703_v60 = vld [vmem:[%s2717_s1 + $0x2e8] sm:$0xf]  ;;  %v1384_v1 = vor.u32 %v1791_v54, %v1383_v53 }
  0x29   : > { %914 = vmatpush.bf16.msra.mxu0 %v1476_v48  ;;  %v1871_v61 = vld [vmem:[%s2717_s1 + $0x2f4] sm:$0xf0]  ;;  %v1788_v62 = vld [vmem:[%s2717_s1 + $0x64] sm:$0xf]  ;;  %v1377_v63 = vld [vmem:[%s2717_s1 + $0x70] sm:$0xf0] }
  0x2a   : > { %v1772_v0 = vld [vmem:[%s2118_s17 + $0x4] sm:$0xf]  ;;  %v1704_v2 = vor.u32 %v1871_v61, %v1703_v60  ;;  %v1313_v3 = vld [vmem:[%s2118_s17 + $0x10] sm:$0x30]  ;;  %v1367_v4 = vld [vmem:[%s2717_s1 + $0x48] sm:$0xf]  ;;  %v1380_v8 = vor.u32 %v1788_v62, %v1377_v63 }
  0x2b   : > { %845 = vmatpush.bf16.msra.mxu1 %v1328_v6  ;;  %v1787_v5 = vld [vmem:[%s2717_s1 + $0x54] sm:$0xf0]  ;;  %v1504_v6 = vor.u32 %v1822_v58, %v1503_v56  ;;  %v1487_v7 = vld [vmem:[%s2717_s1 + $0x140] sm:$0xf]  ;;  %v1818_v9 = vld [vmem:[%s2717_s1 + $0x14c] sm:$0xf0]  ;;  %v2273_v14 = vor.u32 %v1772_v0, %v1313_v3 }
  0x2c   : > { %873 = vmatpush.bf16.msra.mxu2 %v1584_v12  ;;  %952 = vmatpush.bf16.msrb.mxu3 %v1416_v40  ;;  %v1687_v10 = vld [vmem:[%s2717_s1 + $0x2c8] sm:$0xf]  ;;  %v1867_v11 = vld [vmem:[%s2717_s1 + $0x2d4] sm:$0xf0]  ;;  %v1784_v12 = vld [vmem:[%s2717_s1 + $0x44] sm:$0xf]  ;;  %v1368_v15 = vor.u32 %v1787_v5, %v1367_v4  ;;  %v1488_v19 = vor.u32 %v1818_v9, %v1487_v7 }
  0x2d   : > { %915 = vmatpush.bf16.msra.mxu0 %v1460_v59  ;;  %v1688_v16 = vor.u32 %v1867_v11, %v1687_v10  ;;  %v1783_v18 = vld [vmem:[%s2717_s1 + $0x34] sm:$0xf0]  ;;  %v1471_v20 = vld [vmem:[%s2717_s1 + $0x120] sm:$0xf]  ;;  %v1814_v23 = vld [vmem:[%s2717_s1 + $0x12c] sm:$0xf0] }
  0x2e   : > { %846 = vmatmul.bf16.vlgmr.msra.gmra.mxu1 %v2158_v22  ;;  %v1671_v24 = vld [vmem:[%s2717_s1 + $0x2a8] sm:$0xf]  ;;  %v1863_v25 = vld [vmem:[%s2717_s1 + $0x2b4] sm:$0xf0]  ;;  %v1780_v26 = vld [vmem:[%s2717_s1 + $0x24] sm:$0xf]  ;;  %v1472_v35 = vor.u32 %v1814_v23, %v1471_v20 }
  0x2f   : > { %852 = vmatpush.bf16.msrb.mxu1 %v1568_v13  ;;  %874 = vmatmul.bf16.vlgmr.msra.gmra.mxu2 %v2167_v27  ;;  %v1361_v13 = vld [vmem:[%s2717_s1 + $0x50] sm:$0xf0]  ;;  %v1672_v31 = vor.u32 %v1863_v25, %v1671_v24  ;;  %v1335_v33 = vld [vmem:[%s2717_s1 + $0x8] sm:$0xf]  ;;  %v1779_v34 = vld [vmem:[%s2717_s1 + $0x14] sm:$0xf0] }
  0x30   : > { %894 = vmatpush.bf16.msrb.mxu2 %v1444_v17  ;;  %953 = vmatpush.bf16.msrb.mxu3 %v1400_v52  ;;  %v1351_v17 = vld [vmem:[%s2717_s1 + $0x28] sm:$0xf]  ;;  %v1364_v21 = vor.u32 %v1784_v12, %v1361_v13  ;;  %v1810_v36 = vld [vmem:[%s2717_s1 + $0x10c] sm:$0xf0]  ;;  %v1805_v37 = vld [vmem:[%s2717_s1 + $0xec] sm:$0xf]  ;;  %v1336_v46 = vor.u32 %v1779_v34, %v1335_v33 }
  0x31   : > { %978 = vmatpush.bf16.msrb.mxu0 %v1704_v2  ;;  %v1352_v30 = vor.u32 %v1783_v18, %v1351_v17  ;;  %v1449_v38 = vld [vmem:[%s2717_s1 + $0xf8] sm:$0xf0]  ;;  %v1776_v40 = vld [vmem:[%s2717_s1 + $0x4] sm:$0xf]  ;;  %v1859_v42 = vld [vmem:[%s2717_s1 + $0x294] sm:$0xf0] }
  0x32   : > { %916 = vmatmul.bf16.vlgmr.msra.gmra.mxu0 %v2273_v14  ;;  %v1329_v43 = vld [vmem:[%s2717_s1 + $0x10] sm:$0xf0]  ;;  %v1872_v48 = vld [vmem:[%s2717_s1 + $0x304] sm:$0xf]  ;;  %v1452_v50 = vor.u32 %v1805_v37, %v1449_v38  ;;  %v1801_v52 = vld [vmem:[%s2717_s1 + $0xcc] sm:$0xf] }
  0x33   : > { %853 = vmatpush.bf16.msrb.mxu1 %v1552_v29  ;;  %v1345_v29 = vld [vmem:[%s2717_s1 + $0x30] sm:$0xf0]  ;;  %v1433_v53 = vld [vmem:[%s2717_s1 + $0xd8] sm:$0xf0]  ;;  %v1332_v54 = vor.u32 %v1776_v40, %v1329_v43  ;;  %v1575_v56 = vld [vmem:[%s2717_s1 + $0x1e8] sm:$0xf] }
  0x34   : > { %895 = vmatpush.bf16.msrb.mxu2 %v1428_v32  ;;  %954 = vmatpush.bf16.msrb.mxu3 %v1384_v1  ;;  %v1455_v32 = vld [vmem:[%s2717_s1 + $0x100] sm:$0xf]  ;;  %v1348_v39 = vor.u32 %v1780_v26, %v1345_v29  ;;  %v1697_v45 = vld [vmem:[%s2717_s1 + $0x2f0] sm:$0xf0]  ;;  %v1855_v58 = vld [vmem:[%s2717_s1 + $0x274] sm:$0xf0]  ;;  %v1436_v0 = vor.u32 %v1801_v52, %v1433_v53 }
  0x35   : > { %979 = vmatpush.bf16.msrb.mxu0 %v1688_v16  ;;  %v1713_v49 = vld [vmem:[%s2717_s1 + $0x310] sm:$0xf0]  ;;  %v1456_v51 = vor.u32 %v1810_v36, %v1455_v32  ;;  %v1839_v60 = vld [vmem:[%s2717_s1 + $0x1f4] sm:$0xf0]  ;;  %v1864_v61 = vld [vmem:[%s2717_s1 + $0x2c4] sm:$0xf] }
  0x36   : > { %v1716_v59 = vor.u32 %v1872_v48, %v1713_v49  ;;  %v1681_v62 = vld [vmem:[%s2717_s1 + $0x2d0] sm:$0xf0]  ;;  %v1797_v1 = vld [vmem:[%s2717_s1 + $0xac] sm:$0xf]  ;;  %v1417_v2 = vld [vmem:[%s2717_s1 + $0xb8] sm:$0xf0]  ;;  %v1576_v3 = vor.u32 %v1839_v60, %v1575_v56 }
  0x37   : > { %854 = vmatpush.bf16.msrb.mxu1 %v1536_v41  ;;  %v1655_v41 = vld [vmem:[%s2717_s1 + $0x288] sm:$0xf]  ;;  %v1684_v4 = vor.u32 %v1864_v61, %v1681_v62  ;;  %v1851_v7 = vld [vmem:[%s2717_s1 + $0x254] sm:$0xf0]  ;;  %v1860_v9 = vld [vmem:[%s2717_s1 + $0x2a4] sm:$0xf]  ;;  %v1420_v12 = vor.u32 %v1797_v1, %v1417_v2 }
  0x38   : > { %896 = vmatpush.bf16.msrb.mxu2 %v1412_v44  ;;  %955 = vmatpush.bf16.msrb.mxu3 %v1368_v15  ;;  %v1868_v44 = vld [vmem:[%s2717_s1 + $0x2e4] sm:$0xf]  ;;  %v1656_v47 = vor.u32 %v1859_v42, %v1655_v41  ;;  %v1559_v5 = vld [vmem:[%s2717_s1 + $0x1c8] sm:$0xf]  ;;  %v1665_v10 = vld [vmem:[%s2717_s1 + $0x2b0] sm:$0xf0] }
  0x39   : > { %980 = vmatpush.bf16.msrb.mxu0 %v1672_v31  ;;  %v1793_v13 = vld [vmem:[%s2717_s1 + $0x8c] sm:$0xf]  ;;  %v1401_v15 = vld [vmem:[%s2717_s1 + $0x98] sm:$0xf0]  ;;  %v1668_v17 = vor.u32 %v1860_v9, %v1665_v10  ;;  %v1543_v18 = vld [vmem:[%s2717_s1 + $0x1a8] sm:$0xf] }
  0x3a   : > { %v1847_v20 = vld [vmem:[%s2717_s1 + $0x234] sm:$0xf0]  ;;  %v1856_v23 = vld [vmem:[%s2717_s1 + $0x284] sm:$0xf]  ;;  %v1649_v24 = vld [vmem:[%s2717_s1 + $0x290] sm:$0xf0]  ;;  %v1404_v26 = vor.u32 %v1793_v13, %v1401_v15 }
  0x3b   : > { %855 = vmatpush.bf16.msrb.mxu1 %v1520_v55  ;;  %v1700_v55 = vor.u32 %v1868_v44, %v1697_v45  ;;  %v1789_v29 = vld [vmem:[%s2717_s1 + $0x6c] sm:$0xf]  ;;  %v1652_v32 = vor.u32 %v1856_v23, %v1649_v24  ;;  %v1527_v33 = vld [vmem:[%s2717_s1 + $0x188] sm:$0xf]  ;;  %v1827_v36 = vld [vmem:[%s2717_s1 + $0x194] sm:$0xf0] }
  0x3c   : > { %897 = vmatpush.bf16.msrb.mxu2 %v1396_v57  ;;  %956 = vmatpush.bf16.msrb.mxu3 %v1352_v30  ;;  %v1639_v57 = vld [vmem:[%s2717_s1 + $0x268] sm:$0xf]  ;;  %v1385_v30 = vld [vmem:[%s2717_s1 + $0x78] sm:$0xf0]  ;;  %v1852_v37 = vld [vmem:[%s2717_s1 + $0x264] sm:$0xf]  ;;  %v1528_v43 = vor.u32 %v1827_v36, %v1527_v33 }
  0x3d   : > { %981 = vmatpush.bf16.msrb.mxu0 %v1656_v47  ;;  %v1640_v63 = vor.u32 %v1855_v58, %v1639_v57  ;;  %v1591_v34 = vld [vmem:[%s2717_s1 + $0x208] sm:$0xf]  ;;  %v1633_v38 = vld [vmem:[%s2717_s1 + $0x270] sm:$0xf0]  ;;  %v1388_v40 = vor.u32 %v1789_v29, %v1385_v30  ;;  %v1785_v41 = vld [vmem:[%s2717_s1 + $0x4c] sm:$0xf] }
  0x3e   : > { %v1369_v42 = vld [vmem:[%s2717_s1 + $0x58] sm:$0xf0]  ;;  %v1636_v44 = vor.u32 %v1852_v37, %v1633_v38  ;;  %v1511_v45 = vld [vmem:[%s2717_s1 + $0x168] sm:$0xf]  ;;  %v1848_v47 = vld [vmem:[%s2717_s1 + $0x244] sm:$0xf] }
  0x3f   : > { %856 = vmatpush.bf16.msrb.mxu1 %v1504_v6  ;;  %v1623_v6 = vld [vmem:[%s2717_s1 + $0x248] sm:$0xf]  ;;  %v1617_v48 = vld [vmem:[%s2717_s1 + $0x250] sm:$0xf0]  ;;  %v1372_v49 = vor.u32 %v1785_v41, %v1369_v42  ;;  %v1844_v56 = vld [vmem:[%s2717_s1 + $0x224] sm:$0xf] }
  0x40   : > { %898 = vmatpush.bf16.msrb.mxu2 %v1380_v8  ;;  %957 = vmatpush.bf16.msrb.mxu3 %v1336_v46  ;;  %v1835_v8 = vld [vmem:[%s2717_s1 + $0x1d4] sm:$0xf0]  ;;  %v1624_v11 = vor.u32 %v1851_v7, %v1623_v6  ;;  %v1620_v53 = vor.u32 %v1848_v47, %v1617_v48  ;;  %v1601_v57 = vld [vmem:[%s2717_s1 + $0x230] sm:$0xf0]  ;;  %v1337_v60 = vld [vmem:[%s2717_s1 + $0x18] sm:$0xf0] }
  0x41   : > { %982 = vmatpush.bf16.msrb.mxu0 %v1640_v63  ;;  %v1560_v16 = vor.u32 %v1835_v8, %v1559_v5  ;;  %v1823_v46 = vld [vmem:[%s2717_s1 + $0x174] sm:$0xf0]  ;;  %v1604_v62 = vor.u32 %v1844_v56, %v1601_v57  ;;  %v1479_v63 = vld [vmem:[%s2717_s1 + $0x128] sm:$0xf]  ;;  %v1840_v1 = vld [vmem:[%s2717_s1 + $0x204] sm:$0xf] }
  0x42   : > { %v1512_v52 = vor.u32 %v1823_v46, %v1511_v45  ;;  %v1585_v2 = vld [vmem:[%s2717_s1 + $0x210] sm:$0xf0]  ;;  %v1463_v8 = vld [vmem:[%s2717_s1 + $0x108] sm:$0xf]  ;;  %v1811_v9 = vld [vmem:[%s2717_s1 + $0x114] sm:$0xf0] }
  0x43   : > { %857 = vmatpush.bf16.msrb.mxu1 %v1488_v19  ;;  %958 = vmatmul.bf16.vlgmr.msrb.gmra.mxu3 %v2158_v22  ;;  %v1607_v19 = vld [vmem:[%s2717_s1 + $0x228] sm:$0xf]  ;;  %v1588_v7 = vor.u32 %v1840_v1, %v1585_v2  ;;  %v1869_v13 = vld [vmem:[%s2717_s1 + $0x2ec] sm:$0xf]  ;;  %v1705_v15 = vld [vmem:[%s2717_s1 + $0x2f8] sm:$0xf0] }
  0x44   : > { %899 = vmatpush.bf16.msrb.mxu2 %v1364_v21  ;;  %1006 = vmatpush.bf16.msra.mxu3 %v1452_v50  ;;  %v1831_v21 = vld [vmem:[%s2717_s1 + $0x1b4] sm:$0xf0]  ;;  %v1608_v25 = vor.u32 %v1847_v20, %v1607_v19  ;;  %v1781_v50 = vld [vmem:[%s2717_s1 + $0x2c] sm:$0xf]  ;;  %v1561_v24 = vld [vmem:[%s2717_s1 + $0x1d8] sm:$0xf0] }
  0x45   : > { %983 = vmatpush.bf16.msrb.mxu0 %v1624_v11  ;;  %v1544_v31 = vor.u32 %v1831_v21, %v1543_v18  ;;  %v1837_v11 = vld [vmem:[%s2717_s1 + $0x1ec] sm:$0xf]  ;;  %v1464_v18 = vor.u32 %v1811_v9, %v1463_v8  ;;  %v1708_v21 = vor.u32 %v1869_v13, %v1705_v15  ;;  %v1673_v33 = vld [vmem:[%s2717_s1 + $0x2b8] sm:$0xf0]  ;;  %s1886_s21 = smul.u32 80, %s2725_s12 }
  0x46   : > { %v1833_v23 = vld [vmem:[%s2717_s1 + $0x1cc] sm:$0xf]  ;;  %v1529_v37 = vld [vmem:[%s2717_s1 + $0x198] sm:$0xf0] }
  0x47   : > { %858 = vmatpush.bf16.msrb.mxu1 %v1472_v35  ;;  %v1843_v35 = vld [vmem:[%s2717_s1 + $0x214] sm:$0xf0]  ;;  %v1564_v29 = vor.u32 %v1833_v23, %v1561_v24  ;;  %v1825_v36 = vld [vmem:[%s2717_s1 + $0x18c] sm:$0xf]  ;;  %v1641_v45 = vld [vmem:[%s2717_s1 + $0x278] sm:$0xf0]  ;;  %s2685_s29 = scalar_lea.vmem %s2719_s3, %s1886_s21 }
  0x48   : > { %900 = vmatpush.bf16.msrb.mxu2 %v1348_v39  ;;  %1007 = vmatpush.bf16.msra.mxu3 %v1436_v0  ;;  %v1592_v39 = vor.u32 %v1843_v35, %v1591_v34  ;;  %v1815_v0 = vld [vmem:[%s2717_s1 + $0x134] sm:$0xf0]  ;;  %v1857_v38 = vld [vmem:[%s2717_s1 + $0x28c] sm:$0xf] }
  0x49   : > { %984 = vmatpush.bf16.msrb.mxu0 %v1608_v25  ;;  %v1480_v6 = vor.u32 %v1815_v0, %v1479_v63  ;;  %v1865_v25 = vld [vmem:[%s2717_s1 + $0x2cc] sm:$0xf] }
  0x4a   : > { %v1821_v42 = vld [vmem:[%s2717_s1 + $0x16c] sm:$0xf] }
  0x4b   : > { %859 = vmatpush.bf16.msrb.mxu1 %v1456_v51  ;;  %v1353_v51 = vld [vmem:[%s2717_s1 + $0x38] sm:$0xf0]  ;;  %v1817_v48 = vld [vmem:[%s2717_s1 + $0x14c] sm:$0xf] }
  0x4c   : > { %901 = vmatpush.bf16.msrb.mxu2 %v1332_v54  ;;  %1008 = vmatpush.bf16.msra.mxu3 %v1420_v12  ;;  %v1495_v54 = vld [vmem:[%s2717_s1 + $0x148] sm:$0xf]  ;;  %v1356_v58 = vor.u32 %v1781_v50, %v1353_v51  ;;  %v1577_v12 = vld [vmem:[%s2717_s1 + $0x1f8] sm:$0xf0]  ;;  %v1849_v50 = vld [vmem:[%s2717_s1 + $0x24c] sm:$0xf] }
  0x4d   : > { %985 = vmatpush.bf16.msrb.mxu0 %v1592_v39  ;;  %v1580_v19 = vor.u32 %v1837_v11, %v1577_v12  ;;  %v1657_v39 = vld [vmem:[%s2717_s1 + $0x298] sm:$0xf0]  ;;  %v1845_v56 = vld [vmem:[%s2717_s1 + $0x22c] sm:$0xf] }
  0x4e   : > { %860 = vmatmul.bf16.vlgmr.msrb.gmra.mxu1 %v2273_v14  ;;  %v1660_v41 = vor.u32 %v1857_v38, %v1657_v39  ;;  %v1625_v51 = vld [vmem:[%s2717_s1 + $0x258] sm:$0xf0] }
  0x4f   : > { %922 = vmatpush.bf16.msra.mxu1 %v1700_v55  ;;  %902 = vmatmul.bf16.vlgmr.msrb.gmra.mxu2 %v2158_v22  ;;  %v1819_v55 = vld [vmem:[%s2717_s1 + $0x154] sm:$0xf0] }
  0x50   : > { %943 = vmatpush.bf16.msra.mxu2 %v1716_v59  ;;  %1009 = vmatpush.bf16.msra.mxu3 %v1404_v26  ;;  %v1777_v59 = vld [vmem:[%s2717_s1 + $0xc] sm:$0xf]  ;;  %v1496_v61 = vor.u32 %v1819_v55, %v1495_v54  ;;  %v1689_v26 = vld [vmem:[%s2717_s1 + $0x2d8] sm:$0xf0] }
  0x51   : > { %986 = vmatmul.bf16.vlgmr.msrb.gmra.mxu0 %v2167_v27  ;;  %v1340_v5 = vor.u32 %v1777_v59, %v1337_v60  ;;  %v1692_v30 = vor.u32 %v1865_v25, %v1689_v26  ;;  %v1813_v54 = vld [vmem:[%s2717_s1 + $0x12c] sm:$0xf]  ;;  %v1481_v55 = vld [vmem:[%s2717_s1 + $0x138] sm:$0xf0] }
  0x52   : > { %v1484_v57 = vor.u32 %v1813_v54, %v1481_v55  ;;  %v1809_v59 = vld [vmem:[%s2717_s1 + $0x10c] sm:$0xf]  ;;  %v1465_v60 = vld [vmem:[%s2717_s1 + $0x118] sm:$0xf0] }
  0x53   : > { %923 = vmatpush.bf16.msra.mxu1 %v1684_v4  ;;  %v1875_v4 = vld [vmem:[%s2717_s1 + $0x314] sm:$0xf0]  ;;  %v1468_v63 = vor.u32 %v1809_v59, %v1465_v60 }
  0x54   : > { %964 = vmatpush.bf16.msrb.mxu2 %v1576_v3  ;;  %1010 = vmatpush.bf16.msra.mxu3 %v1388_v40  ;;  %v1719_v3 = vld [vmem:[%s2717_s1 + $0x308] sm:$0xf]  ;;  %v1532_v40 = vor.u32 %v1825_v36, %v1529_v37 }
  0x55   : > { %v1720_v10 = vor.u32 %v1875_v4, %v1719_v3 }
  0x57   : > { %924 = vmatpush.bf16.msra.mxu1 %v1668_v17  ;;  %v1721_v17 = vld [vmem:[%s2717_s1 + $0x318] sm:$0xf0] }
  0x58   : > { %965 = vmatpush.bf16.msrb.mxu2 %v1560_v16  ;;  %1011 = vmatpush.bf16.msra.mxu3 %v1372_v49  ;;  %v1873_v16 = vld [vmem:[%s2717_s1 + $0x30c] sm:$0xf]  ;;  %v1497_v49 = vld [vmem:[%s2717_s1 + $0x158] sm:$0xf0] }
  0x59   : > { %v1724_v20 = vor.u32 %v1873_v16, %v1721_v17 }
  0x5b   : > { %925 = vmatpush.bf16.msra.mxu1 %v1652_v32  ;;  %1055 = vmatpush.bf16.msra.mxu0 %v1724_v20  ;;  %v1861_v32 = vld [vmem:[%s2717_s1 + $0x2ac] sm:$0xf] }
  0x5c   : > { %966 = vmatpush.bf16.msrb.mxu2 %v1544_v31  ;;  %1012 = vmatpush.bf16.msra.mxu3 %v1356_v58  ;;  %v1545_v31 = vld [vmem:[%s2717_s1 + $0x1b8] sm:$0xf0]  ;;  %v1676_v35 = vor.u32 %v1861_v32, %v1673_v33 }
  0x5f   : > { %926 = vmatpush.bf16.msra.mxu1 %v1636_v44  ;;  %1726 = vmatmul.msk.bf16.vlgmr.msra.gmra.mxu2 %vm834_vm0, %v2169_v28  ;;  %v1853_v44 = vld [vmem:[%s2717_s1 + $0x26c] sm:$0xf] }
  0x60   : > { %967 = vmatpush.bf16.msrb.mxu2 %v1528_v43  ;;  %1013 = vmatpush.bf16.msra.mxu3 %v1340_v5  ;;  %v1513_v43 = vld [vmem:[%s2717_s1 + $0x178] sm:$0xf0]  ;;  %v1644_v47 = vor.u32 %v1853_v44, %v1641_v45 }
  0x61   : > { %1728 = vmatmul.msk.bf16.vlgmr.msra.gmra.mxu0 %vm834_vm0, %v2169_v28  ;;  %v1516_v46 = vor.u32 %v1821_v42, %v1513_v43 }
  0x63   : > { %927 = vmatpush.bf16.msra.mxu1 %v1620_v53  ;;  %1014 = vmatmul.bf16.vlgmr.msra.gmra.mxu3 %v2158_v22  ;;  %v1829_v22 = vld [vmem:[%s2717_s1 + $0x1ac] sm:$0xf]  ;;  %v1628_v53 = vor.u32 %v1849_v50, %v1625_v51 }
  0x64   : > { %968 = vmatpush.bf16.msrb.mxu2 %v1512_v52  ;;  %v1548_v34 = vor.u32 %v1829_v22, %v1545_v31  ;;  %v1500_v52 = vor.u32 %v1817_v48, %v1497_v49 }
  0x67   : > { %928 = vmatpush.bf16.msra.mxu1 %v1604_v62  ;;  %v1593_v62 = vld [vmem:[%s2717_s1 + $0x218] sm:$0xf0] }
  0x68   : > { %969 = vmatpush.bf16.msrb.mxu2 %v1496_v61  ;;  %v1841_v61 = vld [vmem:[%s2717_s1 + $0x20c] sm:$0xf] }
  0x69   : > { %v1596_v0 = vor.u32 %v1841_v61, %v1593_v62 }
  0x6b   : > { %929 = vmatpush.bf16.msra.mxu1 %v1588_v7 }
  0x6c   : > { %970 = vmatpush.bf16.msrb.mxu2 %v1480_v6 }
  0x6e   : > { %930 = vmatmul.bf16.vlgmr.msra.gmra.mxu1 %v2167_v27 }
  0x6f   : > { %999 = vmatpush.bf16.msrb.mxu1 %v1720_v10 }
  0x70   : > { %971 = vmatpush.bf16.msrb.mxu2 %v1464_v18 }
  0x73   : > { %1020 = vmatpush.bf16.msra.mxu1 %v1580_v19  ;;  %972 = vmatmul.bf16.vlgmr.msrb.gmra.mxu2 %v2273_v14 }
  0x74   : > { %1034 = vmatpush.bf16.msra.mxu2 %v1708_v21 }
  0x77   : > { %1021 = vmatpush.bf16.msra.mxu1 %v1564_v29 }
  0x78   : > { %1035 = vmatpush.bf16.msra.mxu2 %v1692_v30 }
  0x7b   : > { %1022 = vmatpush.bf16.msra.mxu1 %v1548_v34 }
  0x7c   : > { %1036 = vmatpush.bf16.msra.mxu2 %v1676_v35 }
  0x7e   : > { %1727 = vmatmul.msk.bf16.vlgmr.msrb.gmra.mxu1 %vm834_vm0, %v2169_v28  ;;  %v1609_v28 = vld [vmem:[%s2717_s1 + $0x238] sm:$0xf0] }
  0x7f   : > { %1023 = vmatpush.bf16.msra.mxu1 %v1532_v40  ;;  %v1612_v58 = vor.u32 %v1845_v56, %v1609_v28 }
  0x80   : > { %1037 = vmatpush.bf16.msra.mxu2 %v1660_v41 }
  0x83   : > { %1024 = vmatpush.bf16.msra.mxu1 %v1516_v46  ;;  %v1731_v46 = vld [vmem:[%s2718_s2] sm:$0xf] }
  0x84   : > { %1038 = vmatpush.bf16.msra.mxu2 %v1644_v47  ;;  %v1877_v47 = vld [vmem:[%s2718_s2 + $0x4] sm:$0xf0] }
  0x85   : > { %v1732_v49 = vor.u32 %v1877_v47, %v1731_v46 }
  0x87   : > { %1025 = vmatpush.bf16.msra.mxu1 %v1500_v52 }
  0x88   : > { %1039 = vmatpush.bf16.msra.mxu2 %v1628_v53 }
  0x8b   : > { %1026 = vmatpush.bf16.msra.mxu1 %v1484_v57 }
  0x8c   : > { %1040 = vmatpush.bf16.msra.mxu2 %v1612_v58 }
  0x8f   : > { %1027 = vmatpush.bf16.msra.mxu1 %v1468_v63 }
  0x90   : > { %1041 = vmatpush.bf16.msra.mxu2 %v1596_v0 }
  0x92   : > { %1028 = vmatmul.bf16.vlgmr.msra.gmra.mxu1 %v2273_v14 }
  0x93   : > { %1042 = vmatmul.bf16.vlgmr.msra.gmra.mxu2 %v2167_v27 }
  0xa8   : > { %v889_v8 = vpop.f32.mrf.mxu3 }
  0xab   : > { %v847_v2 = vpop.f32.mrf.mxu1 }
  0xaf   : > { %v917_v9 = vpop.f32.mrf.mxu0 }
  0xb0   : > { %v891_v12 = vpop.f32.mrf.mxu3 }
  0xb2   : > { %v875_v1 = vpop.f32.mrf.mxu2 }
  0xb3   : > { %v849_v4 = vpop.f32.mrf.mxu1 }
  0xb7   : > { %v919_v13 = vpop.f32.mrf.mxu0 }
  0xba   : > { %v877_v3 = vpop.f32.mrf.mxu2 }
  0xc6   : > { %v959_v17 = vpop.f32.mrf.mxu3 }
  0xcb   : > { %v861_v6 = vpop.f32.mrf.mxu1 }
  0xcc   : > { %v862_v20 = vadd.f32 %v861_v6, %v847_v2  ;;  %v1739_v2 = vld [vmem:[%s2718_s2 + $0x10] sm:$0xf] }
  0xce   : > { %v987_v14 = vpop.f32.mrf.mxu0  ;;  %v961_v24 = vpop.f32.mrf.mxu3  ;;  %v876_v30 = vadd.f32 %v875_v1, %v862_v20 }
  0xd0   : > { %v890_v34 = vadd.f32 %v889_v8, %v876_v30  ;;  %v1763_v30 = vld [vmem:[%s2718_s2 + $0x40] sm:$0xf] }
  0xd2   : > { %v903_v5 = vpop.f32.mrf.mxu2  ;;  %v1062_v39 = vmul.f32 %v890_v34, %v890_v34 }
  0xd3   : > { %v863_v10 = vpop.f32.mrf.mxu1  ;;  %v918_v53 = vadd.f32 %v917_v9, %v903_v5 }
  0xd4   : > { %v864_v21 = vadd.f32 %v863_v10, %v849_v4 }
  0xd6   : > { %v989_v29 = vpop.f32.mrf.mxu0  ;;  %v878_v22 = vadd.f32 %v877_v3, %v864_v21  ;;  %v1879_v3 = vld [vmem:[%s2718_s2 + $0x14] sm:$0xf0]  ;;  %v1755_v21 = vld [vmem:[%s2718_s2 + $0x30] sm:$0xf] }
  0xd7   : > { %v1740_v9 = vor.u32 %v1879_v3, %v1739_v2 }
  0xd8   : > { %v892_v35 = vadd.f32 %v891_v12, %v878_v22  ;;  %v1885_v22 = vld [vmem:[%s2718_s2 + $0x44] sm:$0xf0] }
  0xda   : > { %v905_v7 = vpop.f32.mrf.mxu2  ;;  %v1064_v40 = vmul.f32 %v892_v35, %v892_v35  ;;  %v1884_v35 = vld [vmem:[%s2718_s2 + $0x44] sm:$0xf] }
  0xdb   : > { %v920_v54 = vadd.f32 %v919_v13, %v905_v7  ;;  %v1876_v13 = vld [vmem:[%s2718_s2 + $0x4] sm:$0xf] }
  0xde   : > { %v1057_v51 = vpop.f32.mrf.mxu0 }
  0xe2   : > { %v945_v11 = vpop.f32.mrf.mxu2 }
  0xe6   : > { %v1015_v48 = vpop.f32.mrf.mxu3  ;;  %v1059_v1 = vpop.f32.mrf.mxu0 }
  0xea   : > { %v947_v16 = vpop.f32.mrf.mxu2 }
  0xeb   : > { %v931_v15 = vpop.f32.mrf.mxu1 }
  0xec   : > { %v932_v28 = vadd.f32 %v931_v15, %v918_v53  ;;  %v1733_v15 = vld [vmem:[%s2718_s2 + $0x8] sm:$0xf0] }
  0xee   : > { %v1017_v58 = vpop.f32.mrf.mxu3  ;;  %v946_v62 = vadd.f32 %v945_v11, %v932_v28 }
  0xf0   : > { %v1063_v6 = vmul.f32 %v946_v62, %v946_v62 }
  0xf3   : > { %v933_v18 = vpop.f32.mrf.mxu1 }
  0xf4   : > { %v934_v57 = vadd.f32 %v933_v18, %v920_v54  ;;  %v1881_v18 = vld [vmem:[%s2718_s2 + $0x24] sm:$0xf0] }
  0xf6   : > { %v973_v19 = vpop.f32.mrf.mxu2  ;;  %v948_v63 = vadd.f32 %v947_v16, %v934_v57  ;;  %v1736_v16 = vor.u32 %v1876_v13, %v1733_v15 }
  0xf7   : > { %v974_v27 = vadd.f32 %v973_v19, %v959_v17  ;;  %v1747_v17 = vld [vmem:[%s2718_s2 + $0x20] sm:$0xf]  ;;  %v1878_v19 = vld [vmem:[%s2718_s2 + $0x14] sm:$0xf] }
  0xf8   : > { %v1065_v7 = vmul.f32 %v948_v63, %v948_v63 }
  0xf9   : > { %v988_v25 = vadd.f32 %v987_v14, %v974_v27  ;;  %v1748_v14 = vor.u32 %v1881_v18, %v1747_v17  ;;  %v1741_v27 = vld [vmem:[%s2718_s2 + $0x18] sm:$0xf0] }
  0xfa   : > { %v1744_v20 = vor.u32 %v1878_v19, %v1741_v27 }
  0xfb   : > { %v1001_v23 = vpop.f32.mrf.mxu1 }
  0xfc   : > { %v1002_v32 = vadd.f32 %v1001_v23, %v988_v25  ;;  %v1883_v23 = vld [vmem:[%s2718_s2 + $0x34] sm:$0xf0]  ;;  %v1880_v25 = vld [vmem:[%s2718_s2 + $0x24] sm:$0xf] }
  0xfe   : > { %v975_v26 = vpop.f32.mrf.mxu2  ;;  %v1066_v37 = vmul.f32 %v1002_v32, %v1002_v32  ;;  %v1882_v32 = vld [vmem:[%s2718_s2 + $0x34] sm:$0xf] }
  0xff   : > { %v976_v31 = vadd.f32 %v975_v26, %v961_v24  ;;  %v1756_v24 = vor.u32 %v1883_v23, %v1755_v21  ;;  %v1749_v26 = vld [vmem:[%s2718_s2 + $0x28] sm:$0xf0] }
 0x100   : > { %v1070_v42 = vadd.f32 %v1066_v37, %v1062_v39 }
 0x101   : > { %v990_v33 = vadd.f32 %v989_v29, %v976_v31  ;;  %v1752_v29 = vor.u32 %v1880_v25, %v1749_v26  ;;  %v1764_v31 = vor.u32 %v1885_v22, %v1763_v30 }
 0x103   : > { %v1003_v36 = vpop.f32.mrf.mxu1 }
 0x104   : > { %v1004_v38 = vadd.f32 %v1003_v36, %v990_v33  ;;  %v1757_v33 = vld [vmem:[%s2718_s2 + $0x38] sm:$0xf0]  ;;  %v1765_v36 = vld [vmem:[%s2718_s2 + $0x48] sm:$0xf0] }
 0x105   : > { %v1760_v34 = vor.u32 %v1882_v32, %v1757_v33  ;;  %v1768_v37 = vor.u32 %v1884_v35, %v1765_v36 }
 0x106   : > { %v1068_v41 = vmul.f32 %v1004_v38, %v1004_v38 }
 0x108   : > { %v1072_v43 = vadd.f32 %v1068_v41, %v1064_v40 }
 0x10a   : > { %v1074_v44 = vpack.c.bf16 %v1072_v43, %v1070_v42 }
 0x10c   : > { %1143 = vmatpush.bf16.xpose.msrb.mxu3 %v1074_v44 }
 0x10f   : > { %v1029_v45 = vpop.f32.mrf.mxu1 }
 0x110   : > { %v1030_v50 = vadd.f32 %v1029_v45, %v1015_v48 }
 0x113   : > { %1144 = vmatmul.bf16.vlgmr.msrb.gmra.mxu3 %v1732_v49 }
 0x116   : > { %v1043_v52 = vpop.f32.mrf.mxu2 }
 0x117   : > { %v1044_v55 = vadd.f32 %v1043_v52, %v1030_v50  ;;  %v1031_v56 = vpop.f32.mrf.mxu1 }
 0x118   : > { %v1032_v60 = vadd.f32 %v1031_v56, %v1017_v58 }
 0x119   : > { %v1058_v59 = vadd.f32 %v1057_v51, %v1044_v55 }
 0x11b   : > { %v1067_v4 = vmul.f32 %v1058_v59, %v1058_v59 }
 0x11d   : > { %v1071_v10 = vadd.f32 %v1067_v4, %v1063_v6 }
 0x11e   : > { %v1045_v61 = vpop.f32.mrf.mxu2 }
 0x11f   : > { %v1046_v0 = vadd.f32 %v1045_v61, %v1032_v60 }
 0x121   : > { %v1060_v5 = vadd.f32 %v1059_v1, %v1046_v0 }
 0x123   : > { %v1069_v8 = vmul.f32 %v1060_v5, %v1060_v5  ;;  %1149 = vmatmul.bf16.gmra.mxu3 %v1740_v9 }
 0x125   : > { %v1073_v12 = vadd.f32 %v1069_v8, %v1065_v7 }
 0x127   : > { %v1075_v11 = vpack.c.bf16 %v1073_v12, %v1071_v10 }
 0x129   : > { %1177 = vmatpush.bf16.xpose.msrb.mxu0 %v1075_v11 }
 0x130   : > { %1178 = vmatmul.bf16.vlgmr.msrb.gmra.mxu0 %v1736_v16 }
 0x133   : > { %1154 = vmatmul.bf16.gmra.mxu3 %v1748_v14 }
 0x140   : > { %1183 = vmatmul.bf16.gmra.mxu0 %v1744_v20 }
 0x143   : > { %1159 = vmatmul.bf16.gmra.mxu3 %v1756_v24 }
 0x150   : > { %1188 = vmatmul.bf16.gmra.mxu0 %v1752_v29 }
 0x153   : > { %1164 = vmatmul.bf16.gmra.mxu3 %v1764_v31 }
 0x160   : > { %1193 = vmatmul.bf16.gmra.mxu0 %v1760_v34 }
 0x170   : > { %1198 = vmatmul.bf16.gmra.mxu0 %v1768_v37 }
 0x196   : > { %v1145_v38 = vpop.f32.mrf.mxu3 }
 0x19e   : > { %v1147_v39 = vpop.f32.mrf.mxu3 }
 0x1a6   : > { %v1150_v42 = vpop.f32.mrf.mxu3 }
 0x1ad   : > { %v1179_v40 = vpop.f32.mrf.mxu0 }
 0x1ae   : > { %v1180_v41 = vadd.f32 %v1179_v40, %v1145_v38  ;;  %v1152_v45 = vpop.f32.mrf.mxu3 }
 0x1b0   : > { %1205 = vst.msk [vmem:[%s2685_s29] sm:$0xff] %vm1204_vm1, %v1180_v41 }
 0x1b5   : > { %v1181_v43 = vpop.f32.mrf.mxu0 }
 0x1b6   : > { %v1182_v44 = vadd.f32 %v1181_v43, %v1147_v39  ;;  %v1155_v48 = vpop.f32.mrf.mxu3 }
 0x1b8   : > { %1206 = vst.msk [vmem:[%s2685_s29 + $0x8] sm:$0xff] %vm1204_vm1, %v1182_v44 }
 0x1bd   : > { %v1184_v46 = vpop.f32.mrf.mxu0 }
 0x1be   : > { %v1185_v47 = vadd.f32 %v1184_v46, %v1150_v42  ;;  %v1157_v52 = vpop.f32.mrf.mxu3 }
 0x1c0   : > { %1207 = vst.msk [vmem:[%s2685_s29 + $0x10] sm:$0xff] %vm1204_vm1, %v1185_v47 }
 0x1c5   : > { %v1186_v49 = vpop.f32.mrf.mxu0 }
 0x1c6   : > { %v1187_v50 = vadd.f32 %v1186_v49, %v1152_v45  ;;  %v1160_v56 = vpop.f32.mrf.mxu3 }
 0x1c8   : > { %1208 = vst.msk [vmem:[%s2685_s29 + $0x18] sm:$0xff] %vm1204_vm1, %v1187_v50 }
 0x1cd   : > { %v1189_v51 = vpop.f32.mrf.mxu0 }
 0x1ce   : > { %v1190_v53 = vadd.f32 %v1189_v51, %v1155_v48  ;;  %v1162_v58 = vpop.f32.mrf.mxu3 }
 0x1d0   : > { %1209 = vst.msk [vmem:[%s2685_s29 + $0x20] sm:$0xff] %vm1204_vm1, %v1190_v53 }
 0x1d5   : > { %v1191_v54 = vpop.f32.mrf.mxu0 }
 0x1d6   : > { %v1192_v55 = vadd.f32 %v1191_v54, %v1157_v52  ;;  %v1165_v61 = vpop.f32.mrf.mxu3 }
 0x1d8   : > { %1210 = vst.msk [vmem:[%s2685_s29 + $0x28] sm:$0xff] %vm1204_vm1, %v1192_v55 }
 0x1dd   : > { %v1194_v28 = vpop.f32.mrf.mxu0 }
 0x1de   : > { %v1195_v57 = vadd.f32 %v1194_v28, %v1160_v56  ;;  %v1167_v0 = vpop.f32.mrf.mxu3 }
 0x1e0   : > { %1211 = vst.msk [vmem:[%s2685_s29 + $0x30] sm:$0xff] %vm1204_vm1, %v1195_v57 }
 0x1e5   : > { %v1196_v59 = vpop.f32.mrf.mxu0 }
 0x1e6   : > { %v1197_v60 = vadd.f32 %v1196_v59, %v1162_v58 }
 0x1e8   : > { %1212 = vst.msk [vmem:[%s2685_s29 + $0x38] sm:$0xff] %vm1204_vm1, %v1197_v60 }
 0x1ed   : > { %v1199_v62 = vpop.f32.mrf.mxu0 }
 0x1ee   : > { %v1200_v63 = vadd.f32 %v1199_v62, %v1165_v61 }
 0x1f0   : > { %1213 = vst.msk [vmem:[%s2685_s29 + $0x40] sm:$0xff] %vm1204_vm1, %v1200_v63 }
 0x1f5   : > { %v1201_v1 = vpop.f32.mrf.mxu0 }
 0x1f6   : > { %v1202_v2 = vadd.f32 %v1201_v1, %v1167_v0 }
 0x1f8   : > { %1214 = vst.msk [vmem:[%s2685_s29 + $0x48] sm:$0xff] %vm1204_vm1, %v1202_v2 }
 0x1f9 PF: > { %s13_s14 = sadd.s32 1, %s1933_s14   ;;  %s2720_s12 = smov %s1929_s13 }
 0x1fa   : > { %p10_p5 = scmp.ge.s32.totalorder %s13_s14, 4   ;;  %s2721_s13 = smov %s2723_s15 }
 0x1fc   :  { %12 = sbr.rel (!%p10_p5) target bundleno = 2 (0x2), region = 62 }

</bundles_post_ra>
